<compile_context>
chip_gen: v6e
topology: v6e:2x2x1
jax: 0.10.0
libtpu: 0.0.40
codegen_flags: <defaults>
</compile_context>

<pallas_src>
import jax
import jax.numpy as jnp
from jax.experimental import pallas as pl
from jax.experimental.pallas import tpu as pltpu

_LANE = 128
_MIB = 1024 * 1024


# ----------------------------- kernels ---------------------------------------


def _transpose_tile_kernel(x_ref, o_ref):
    # x_ref: (ts, th) VMEM tile ; o_ref: (th, ts) VMEM tile (batch dim squeezed)
    o_ref[...] = x_ref[...].T


def _transpose_batched_kernel(x_ref, o_ref):
    # x_ref: (tb, S, H) VMEM block ; o_ref: (tb, H, S) VMEM block
    o_ref[...] = jnp.swapaxes(x_ref[...], 1, 2)


# ----------------------------- tile selection ---------------------------------


def _pick_tiles(S, H, itemsize, target_bytes):
    """Tile sizes for the (S, H) slab.

    A dim small enough gets a full-extent block (always legal under the
    (8,128) rule); larger dims get a 128-multiple tile with a cdiv grid and a
    ragged (masked) last block -- there is no full-dim fallback that could
    exceed VMEM. Tiled dims are grown toward `target_bytes` per buffer so
    shapes with one narrow dim still move a few MiB per grid step.
    """
    base = 512 if itemsize >= 4 else 1024  # 1 MiB f32 / 2 MiB bf16 starting tile
    ts = S if S <= base else base
    th = H if H <= base else base

    def grow(t, dim, other):
        if t == dim:  # already full extent
            return t
        while t + _LANE <= dim and (t + _LANE) * other * itemsize <= target_bytes:
            t += _LANE
        return t

    # Grow the H tile first (contiguous lane dim of the read), then the S tile
    # (lane dim of the write).
    th = grow(th, H, ts)
    ts = grow(ts, S, th)
    return ts, th


# ----------------------------- wrapper -----------------------------------------


def pallas_transpose(x, dim_1=1, dim_2=2):
    """Pallas equivalent of `x.transpose(dim_1, dim_2)` for a 3D (B, S, H) input."""
    assert x.ndim == 3, "this kernel is specialized to 3D (B, S, H) inputs"
    d1, d2 = dim_1 % 3, dim_2 % 3
    assert {d1, d2} == {1, 2}, "kernel is specialized to swapping dims 1 and 2"

    B, S, H = x.shape
    itemsize = jnp.dtype(x.dtype).itemsize
    out_shape = jax.ShapeDtypeStruct((B, H, S), x.dtype)
    cost = pl.CostEstimate(
        flops=0, transcendentals=0, bytes_accessed=2 * B * S * H * itemsize
    )

    slab_bytes = S * H * itemsize
    SMALL_SLAB = 2 * _MIB   # per-batch slab threshold for the batched path
    TARGET = 2 * _MIB       # per-buffer block-size target

    if slab_bytes <= SMALL_SLAB:
        # ---- small-slab path: fold batches into one block (cdiv grid, ragged
        #      last batch-block) so per-step overhead is amortized.
        tb = max(1, min(B, TARGET // max(slab_bytes, 1)))
        block_bytes = tb * slab_bytes
        vmem_limit = min(max(4 * block_bytes + 4 * _MIB, 16 * _MIB), 48 * _MIB)
        return pl.pallas_call(
            _transpose_batched_kernel,
            out_shape=out_shape,
            grid_spec=pltpu.PrefetchScalarGridSpec(
                num_scalar_prefetch=0,
                grid=(pl.cdiv(B, tb),),
                in_specs=[pl.BlockSpec((tb, S, H), lambda b: (b, 0, 0))],
                out_specs=pl.BlockSpec((tb, H, S), lambda b: (b, 0, 0)),
            ),
            compiler_params=pltpu.CompilerParams(
                dimension_semantics=("parallel",),
                vmem_limit_bytes=vmem_limit,
            ),
            cost_estimate=cost,
        )(x)

    # ---- general path: lane-dense tiles over the (S, H) slab, batch squeezed,
    #      cdiv grid with masked ragged last blocks.
    ts, th = _pick_tiles(S, H, itemsize, TARGET)
    block_bytes = ts * th * itemsize
    # Buffered(3) on input and output -> 3 * (in + out) live buffers + headroom.
    vmem_limit = min(max(6 * block_bytes + 8 * _MIB, 16 * _MIB), 48 * _MIB)

    return pl.pallas_call(
        _transpose_tile_kernel,
        out_shape=out_shape,
        grid_spec=pltpu.PrefetchScalarGridSpec(
            num_scalar_prefetch=0,
            grid=(B, pl.cdiv(S, ts), pl.cdiv(H, th)),
            in_specs=[
                pl.BlockSpec(
                    (pl.Squeezed(), ts, th),
                    lambda b, i, j: (b, i, j),
                    pipeline_mode=pl.Buffered(3),
                ),
            ],
            out_specs=pl.BlockSpec(
                (pl.Squeezed(), th, ts),
                lambda b, i, j: (b, j, i),
                pipeline_mode=pl.Buffered(3),
            ),
        ),
        compiler_params=pltpu.CompilerParams(
            dimension_semantics=("parallel", "parallel", "parallel"),
            vmem_limit_bytes=vmem_limit,
        ),
        cost_estimate=cost,
    )(x)


# ----------------------------- test --------------------------------------------

if __name__ == "__main__":
    key = jax.random.PRNGKey(0)

    # 1) Module under test: Transpose(1, 2) at the small reference shape
    #    (small-slab / batched path).
    B, S, H = 2, 8, 32
    x = jax.random.normal(key, (B, S, H), dtype=jnp.float32)
    y = jax.block_until_ready(pallas_transpose(x, dim_1=1, dim_2=2))
    assert y.shape == (B, H, S)
    assert jnp.array_equal(y, jnp.swapaxes(x, 1, 2))

    # 2) Tiled path with a ragged last S-block (exercises cdiv + masked writes).
    B2, S2, H2 = 1, 1280, 640  # slab = 3.3 MiB > threshold -> tiled path
    x2 = jax.random.normal(jax.random.PRNGKey(0), (B2, S2, H2), dtype=jnp.float32)
    y2 = jax.block_until_ready(pallas_transpose(x2, dim_1=1, dim_2=2))
    assert y2.shape == (B2, H2, S2)
    assert jnp.array_equal(y2, jnp.swapaxes(x2, 1, 2))

    # 3) Small-slab path with a ragged last batch block (B not a multiple of tb).
    B3, S3, H3 = 3, 256, 768  # slab = 0.75 MiB -> tb=2, cdiv(3,2)=2 grid steps
    x3 = jax.random.normal(jax.random.PRNGKey(0), (B3, S3, H3), dtype=jnp.float32)
    y3 = jax.block_until_ready(pallas_transpose(x3, dim_1=1, dim_2=2))
    assert y3.shape == (B3, H3, S3)
    assert jnp.array_equal(y3, jnp.swapaxes(x3, 1, 2))

    print("KERNEL_OK")
</pallas_src>

<mosaic_0001>
module attributes {stable_mosaic.version = 11 : i64} {
  func.func @_transpose_batched_kernel(%arg0: i32, %arg1: memref<2x8x32xf32, #tpu.memory_space<vmem>>, %arg2: memref<2x32x8xf32, #tpu.memory_space<vmem>>) attributes {dimension_semantics = [#tpu.dimension_semantics<parallel>], iteration_bounds = array<i64: 1>, scalar_prefetch = 0 : i64, scratch_operands = 0 : i64, tpu.core_type = #tpu.core_type<tc>, window_params = [{transform_indices = @transform_0, window_bounds = array<i64: 2, 8, 32>}, {transform_indices = @transform_1, window_bounds = array<i64: 2, 32, 8>}]} {
    %c0 = arith.constant 0 : index
    %c0_0 = arith.constant 0 : index
    %c0_1 = arith.constant 0 : index
    %0 = vector.load %arg1[%c0, %c0_0, %c0_1] : memref<2x8x32xf32, #tpu.memory_space<vmem>>, vector<2x8x32xf32>
    %1 = tpu.transpose %0, [0, 2, 1] : vector<2x8x32xf32> -> vector<2x32x8xf32>
    %c0_2 = arith.constant 0 : index
    %c0_3 = arith.constant 0 : index
    %c0_4 = arith.constant 0 : index
    %2 = vector.load %arg2[%c0_2, %c0_3, %c0_4] : memref<2x32x8xf32, #tpu.memory_space<vmem>>, vector<2x32x8xf32>
    tpu.vector_store %arg2[%c0_2, %c0_3, %c0_4], %1 {strides = array<i32>} : memref<2x32x8xf32, #tpu.memory_space<vmem>>, vector<2x32x8xf32>,
    return
  }
  func.func @transform_0(%arg0: i32) -> (i32, i32, i32) {
    %c0_i32 = arith.constant 0 : i32
    %c0_i32_0 = arith.constant 0 : i32
    %c0_i32_1 = arith.constant 0 : i32
    return %arg0, %c0_i32, %c0_i32_0 : i32, i32, i32
  }
  func.func @transform_1(%arg0: i32) -> (i32, i32, i32) {
    %c0_i32 = arith.constant 0 : i32
    %c0_i32_0 = arith.constant 0 : i32
    %c0_i32_1 = arith.constant 0 : i32
    return %arg0, %c0_i32, %c0_i32_0 : i32, i32, i32
  }
}

</mosaic_0001>

<bundles_post_ra>
// kernel: tpu_custom_call.1
= control target key start
LH: loop header
LB: loop body
LE: loop exit
PB: predicated region body
PF: predicated region fallthrough
CT: control target
= control target key end

     0   :  { %6 = vsyncpa [#allocation3], 0  ;;  %s128_s6 = smov [#allocation2]   ;;  %s176_s0 = inlined_call_operand.hbm [shape: f32[2,8,32], index: 0, kind: input, shape index: {}]   ;;  %s177_s1 = inlined_call_operand.vmem [shape: f32[2,32,8], index: 1, kind: output, shape index: {}]  }
   0x1   :  { %s12_s7 = sshll.u32 %s128_s6, 4  ;;  %s13_s7 = int_to_ptr.vmem [resolvable:$true] %s12_s7 }
   0x2   :  { %s114_s8 = scalar_lea.vmem %s13_s7, 256  ;;  %p119_p1 = scmp.lt.s32.totalorder %s13_s7, %s13_s7 }
   0x3   :  { %p115_p0 = scmp.ne.s32.totalorder %s13_s7, %s114_s8  ;;  %p120_p2 = scmp.lt.s32.totalorder %s114_s8, %s114_s8 }
   0x5   :  { %p121_p3 = por %p120_p2, %p119_p1 }
   0x7   :  { %p122_p4 = pnand %p121_p3, %p115_p0 }
   0x9   :  { %125 = shalt.err (!%p122_p4)
}
   0xa   :  { %s129_s9 = smov 128   ;;  %s130_s10 = smov 8  }
   0xb   :  { %18 = dma.hbm_to_vmem [thread:$0]  %s176_s0, 256, %s13_s7, [#allocation3], %s129_s9, %s129_s9, %s130_s10  }
   0xc   :  { %126 = dma.done.wait [#allocation3], 256  }
   0xd   :  { %127 = vsyncadd [#allocation3], 4294967040  ;;  %v22_v0 = vld [vmem:[#allocation2] sm:$0xff]  ;;  %v23_v1 = vld [vmem:[#allocation2 + $0x8] sm:$0xff]  ;;  %vm88_vm0 = vcmask 64512  }
   0xe   :  { %24 = vxpose.xlu0.b32.start.end [1/1] (short) (narrow) %v22_v0, 32 }
  0x1b   :  { %56 = vxpose.xlu0.b32.start.end [1/1] (short) (narrow) %v23_v1, 32 }
  0x8a   :  { %v40_v2 = vpop.trf.xlu0 }
  0x8b   :  { %89 = vst.msk [vmem:[%s177_s1] sm:$0xff] %vm88_vm0, %v40_v2 }
  0x8e   :  { %v41_v3 = vpop.trf.xlu0 }
  0x8f   :  { %90 = vst.msk [vmem:[%s177_s1 + $0x8] sm:$0xff] %vm88_vm0, %v41_v3 }
  0x92   :  { %v42_v4 = vpop.trf.xlu0 }
  0x93   :  { %91 = vst.msk [vmem:[%s177_s1 + $0x10] sm:$0xff] %vm88_vm0, %v42_v4 }
  0x96   :  { %v43_v5 = vpop.trf.xlu0 }
  0x97   :  { %92 = vst.msk [vmem:[%s177_s1 + $0x18] sm:$0xff] %vm88_vm0, %v43_v5 }
  0x9a   :  { %v72_v6 = vpop.trf.xlu0 }
  0x9b   :  { %93 = vst.msk [vmem:[%s177_s1 + $0x20] sm:$0xff] %vm88_vm0, %v72_v6 }
  0x9e   :  { %v73_v7 = vpop.trf.xlu0 }
  0x9f   :  { %94 = vst.msk [vmem:[%s177_s1 + $0x28] sm:$0xff] %vm88_vm0, %v73_v7 }
  0xa2   :  { %v74_v8 = vpop.trf.xlu0 }
  0xa3   :  { %95 = vst.msk [vmem:[%s177_s1 + $0x30] sm:$0xff] %vm88_vm0, %v74_v8 }
  0xa6   :  { %v75_v9 = vpop.trf.xlu0 }
  0xa7   :  { %96 = vst.msk [vmem:[%s177_s1 + $0x38] sm:$0xff] %vm88_vm0, %v75_v9 }
  0xa8   :  { %101 = vsyncpa [#allocation3], 1 }

</bundles_post_ra>
